<compile_context>
chip_gen: v7x
topology: tpu7x:2x2x1
jax: 0.10.0
libtpu: 0.0.40
codegen_flags: <defaults>
</compile_context>

<pallas_src>
import functools

import jax
import jax.numpy as jnp
from jax.experimental import pallas as pl
from jax.experimental.pallas import tpu as pltpu

EPS = 1e-5  # PyTorch BatchNorm2d default


def fused_conv3x3_kernel(x_ref, m1_ref, s1_ref, t1_ref, m2_ref, s2_ref, t2_ref,
                         o_ref, xpad1_ref, xpad2_ref, *, H, W, Cin, Cout):
    """One batch element: [conv3x3+BN+ReLU] x 2, intermediate kept in VMEM.

    x_ref    : (1, H, W*Cin)                 bf16, NHWC with W,C merged on lanes
    m1_ref   : (3, (W+2)*Cin,  W*Cout)       bf16 banded weight matrices, stage 1
    s1_ref   : (1, W*Cout)                   f32 fused BN scale (tiled over W)
    t1_ref   : (1, W*Cout)                   f32 fused BN shift (tiled over W)
    m2_ref   : (3, (W+2)*Cout, W*Cout)       bf16 banded weight matrices, stage 2
    s2_ref/t2_ref : (1, W*Cout)              f32
    o_ref    : (1, H, W*Cout)                f32, lane-dense output block
    xpad1_ref: VMEM (H+2, (W+2)*Cin)  bf16   stage-1 input + zero halo
    xpad2_ref: VMEM (H+2, (W+2)*Cout) bf16   stage-1 activation + zero halo
    """
    # ---- stage 1: build zero-padded input in VMEM ----
    xpad1_ref[...] = jnp.zeros(xpad1_ref.shape, xpad1_ref.dtype)
    xpad1_ref[pl.ds(1, H), pl.ds(Cin, W * Cin)] = x_ref[0]

    acc1 = jnp.zeros((H, W * Cout), jnp.float32)
    for kh in range(3):  # 3 banded matmuls instead of 9 per-tap K=Cin dots
        rows = xpad1_ref[pl.ds(kh, H), :]                  # (H, (W+2)*Cin) bf16
        acc1 = acc1 + jnp.dot(rows, m1_ref[kh],
                              preferred_element_type=jnp.float32)
    a1 = jnp.maximum(acc1 * s1_ref[...] + t1_ref[...], 0.0)  # BN affine + ReLU, f32

    # ---- stage 2: fresh zero halo around the stage-1 activation (matches pad=1) ----
    xpad2_ref[...] = jnp.zeros(xpad2_ref.shape, xpad2_ref.dtype)
    xpad2_ref[pl.ds(1, H), pl.ds(Cout, W * Cout)] = a1.astype(xpad2_ref.dtype)

    acc2 = jnp.zeros((H, W * Cout), jnp.float32)
    for kh in range(3):
        rows = xpad2_ref[pl.ds(kh, H), :]                  # (H, (W+2)*Cout) bf16
        acc2 = acc2 + jnp.dot(rows, m2_ref[kh],
                              preferred_element_type=jnp.float32)
    y = jnp.maximum(acc2 * s2_ref[...] + t2_ref[...], 0.0)
    o_ref[0] = y                                            # lane-dense store


def make_band_matrices(w_hwio, w_out, dtype=jnp.bfloat16):
    """(3,3,Cin,Cout) conv weights -> (3, (w_out+2)*Cin, w_out*Cout) banded matrices.

    M[kh, (w+kw)*Cin + ci, w*Cout + co] = w_hwio[kh, kw, ci, co]; zeros elsewhere.
    This bakes the kw window shift into the matmul so the kernel never slices the
    (sublane-misaligned) W axis.
    """
    _, _, cin, cout = w_hwio.shape
    wp = w_out + 2
    p = jnp.arange(wp)
    w = jnp.arange(w_out)
    k = jnp.arange(3)
    # S[kw, p, w] = 1 iff p == w + kw
    S = (p[None, :, None] == (w[None, None, :] + k[:, None, None])).astype(w_hwio.dtype)
    m = jnp.einsum('kpw,hkio->hpiwo', S, w_hwio)            # (3, wp, Cin, w_out, Cout)
    return m.reshape(3, wp * cin, w_out * cout).astype(dtype)


def fuse_bn_tiled(p, w_out):
    """Fold conv bias + inference BN into per-channel affine, tiled across W lanes."""
    scale = p["gamma"] / jnp.sqrt(p["var"] + EPS)
    shift = p["beta"] + (p["b"] - p["mean"]) * scale
    return (jnp.tile(scale, w_out).reshape(1, -1).astype(jnp.float32),
            jnp.tile(shift, w_out).reshape(1, -1).astype(jnp.float32))


def conv3x3_forward_nhwc(x_nhwc, params1, params2):
    """NHWC in / NHWC out, both stages in one fused pallas_call."""
    N, H, W, Cin = x_nhwc.shape
    Cout = params1["w"].shape[-1]
    Wp = W + 2

    x = x_nhwc.reshape(N, H, W * Cin).astype(jnp.bfloat16)   # free reshape of NHWC
    m1 = make_band_matrices(params1["w"], W)
    m2 = make_band_matrices(params2["w"], W)
    s1, t1 = fuse_bn_tiled(params1, W)
    s2, t2 = fuse_bn_tiled(params2, W)

    kernel = functools.partial(fused_conv3x3_kernel, H=H, W=W, Cin=Cin, Cout=Cout)

    out = pl.pallas_call(
        kernel,
        out_shape=jax.ShapeDtypeStruct((N, H, W * Cout), jnp.float32),
        grid_spec=pltpu.PrefetchScalarGridSpec(
            num_scalar_prefetch=0,
            grid=(N,),
            in_specs=[
                pl.BlockSpec((1, H, W * Cin), lambda n: (n, 0, 0)),
                pl.BlockSpec((3, Wp * Cin, W * Cout), lambda n: (0, 0, 0)),
                pl.BlockSpec((1, W * Cout), lambda n: (0, 0)),
                pl.BlockSpec((1, W * Cout), lambda n: (0, 0)),
                pl.BlockSpec((3, Wp * Cout, W * Cout), lambda n: (0, 0, 0)),
                pl.BlockSpec((1, W * Cout), lambda n: (0, 0)),
                pl.BlockSpec((1, W * Cout), lambda n: (0, 0)),
            ],
            out_specs=pl.BlockSpec((1, H, W * Cout), lambda n: (n, 0, 0)),
            scratch_shapes=[
                pltpu.VMEM((H + 2, Wp * Cin), jnp.bfloat16),
                pltpu.VMEM((H + 2, Wp * Cout), jnp.bfloat16),
            ],
        ),
        compiler_params=pltpu.CompilerParams(dimension_semantics=("parallel",)),
    )(x, m1, s1, t1, m2, s2, t2)

    return out.reshape(N, H, W, Cout)


def conv3x3_forward(x_nchw, params1, params2):
    """Matches Conv3x3.forward (PyTorch NCHW interface)."""
    x = jnp.transpose(x_nchw, (0, 2, 3, 1))   # NCHW -> NHWC (only for API compat)
    y = conv3x3_forward_nhwc(x, params1, params2)
    return jnp.transpose(y, (0, 3, 1, 2))     # NHWC -> NCHW


def init_stage_params(key, in_ch, out_ch):
    """Deterministic, non-trivial parameters for one Conv2d+BatchNorm2d stage."""
    k_w, k_b, k_g, k_bt, k_m, k_v = jax.random.split(key, 6)
    w = jax.random.normal(k_w, (3, 3, in_ch, out_ch), jnp.float32) * 0.1   # HWIO
    b = jax.random.normal(k_b, (out_ch,), jnp.float32) * 0.1
    gamma = 1.0 + 0.1 * jax.random.normal(k_g, (out_ch,), jnp.float32)
    beta = 0.1 * jax.random.normal(k_bt, (out_ch,), jnp.float32)
    running_mean = 0.1 * jax.random.normal(k_m, (out_ch,), jnp.float32)
    running_var = 1.0 + 0.1 * jax.random.uniform(k_v, (out_ch,), jnp.float32)
    return dict(w=w, b=b, gamma=gamma, beta=beta,
                mean=running_mean, var=running_var)


def reference_forward(x_nchw, params1, params2):
    """Pure-JAX reference (lax conv). Conv operands cast to bf16 with f32 accumulation
    to mirror the kernel's MXU precision; BN/ReLU epilogue in f32."""
    def stage(x_nhwc, p):
        y = jax.lax.conv_general_dilated(
            x_nhwc.astype(jnp.bfloat16), p["w"].astype(jnp.bfloat16),
            window_strides=(1, 1), padding="SAME",
            dimension_numbers=("NHWC", "HWIO", "NHWC"),
            preferred_element_type=jnp.float32)
        y = y + p["b"]
        y = (y - p["mean"]) / jnp.sqrt(p["var"] + EPS) * p["gamma"] + p["beta"]
        return jnp.maximum(y, 0.0)

    x = jnp.transpose(x_nchw, (0, 2, 3, 1))
    x = stage(x, params1)
    x = stage(x, params2)
    return jnp.transpose(x, (0, 3, 1, 2))


if __name__ == "__main__":
    key = jax.random.PRNGKey(0)
    k_x, k_p1, k_p2 = jax.random.split(key, 3)

    N, C_IN, C_OUT, H, W = 2, 4, 8, 16, 16
    x = jax.random.normal(k_x, (N, C_IN, H, W), jnp.float32)   # NCHW, like PyTorch

    params1 = init_stage_params(k_p1, C_IN, C_OUT)
    params2 = init_stage_params(k_p2, C_OUT, C_OUT)

    fwd = jax.jit(conv3x3_forward)
    out = jax.block_until_ready(fwd(x, params1, params2))
    ref = jax.block_until_ready(reference_forward(x, params1, params2))

    assert out.shape == (N, C_OUT, H, W), out.shape
    max_err = float(jnp.max(jnp.abs(out - ref)))
    assert jnp.allclose(out, ref, atol=5e-3, rtol=5e-3), max_err

    print("KERNEL_OK")
</pallas_src>

<mosaic_0001>
module attributes {stable_mosaic.version = 11 : i64} {
  func.func @fused_conv3x3_kernel(%arg0: i32, %arg1: memref<1x16x64xbf16, #tpu.memory_space<vmem>>, %arg2: memref<3x72x128xbf16, #tpu.memory_space<vmem>>, %arg3: memref<1x128xf32, #tpu.memory_space<vmem>>, %arg4: memref<1x128xf32, #tpu.memory_space<vmem>>, %arg5: memref<3x144x128xbf16, #tpu.memory_space<vmem>>, %arg6: memref<1x128xf32, #tpu.memory_space<vmem>>, %arg7: memref<1x128xf32, #tpu.memory_space<vmem>>, %arg8: memref<1x16x128xf32, #tpu.memory_space<vmem>>, %arg9: memref<18x72xbf16, #tpu.memory_space<vmem>>, %arg10: memref<18x144xbf16, #tpu.memory_space<vmem>>) attributes {dimension_semantics = [#tpu.dimension_semantics<parallel>], iteration_bounds = array<i64: 2>, scalar_prefetch = 0 : i64, scratch_operands = 2 : i64, tpu.core_type = #tpu.core_type<tc>, window_params = [{transform_indices = @transform_0, window_bounds = array<i64: 1, 16, 64>}, {pipeline_mode = #tpu.pipeline_mode<synchronous>, transform_indices = @transform_1, window_bounds = array<i64: 3, 72, 128>}, {pipeline_mode = #tpu.pipeline_mode<synchronous>, transform_indices = @transform_2, window_bounds = array<i64: 1, 128>}, {pipeline_mode = #tpu.pipeline_mode<synchronous>, transform_indices = @transform_3, window_bounds = array<i64: 1, 128>}, {pipeline_mode = #tpu.pipeline_mode<synchronous>, transform_indices = @transform_4, window_bounds = array<i64: 3, 144, 128>}, {pipeline_mode = #tpu.pipeline_mode<synchronous>, transform_indices = @transform_5, window_bounds = array<i64: 1, 128>}, {pipeline_mode = #tpu.pipeline_mode<synchronous>, transform_indices = @transform_6, window_bounds = array<i64: 1, 128>}, {transform_indices = @transform_7, window_bounds = array<i64: 1, 16, 128>}]} {
    %cst = arith.constant 0.000000e+00 : bf16
    %0 = vector.broadcast %cst : bf16 to vector<18x72xbf16>
    %c0 = arith.constant 0 : index
    %c0_0 = arith.constant 0 : index
    %1 = vector.load %arg9[%c0, %c0_0] : memref<18x72xbf16, #tpu.memory_space<vmem>>, vector<18x72xbf16>
    tpu.vector_store %arg9[%c0, %c0_0], %0 {strides = array<i32>} : memref<18x72xbf16, #tpu.memory_space<vmem>>, vector<18x72xbf16>,
    %c0_1 = arith.constant 0 : index
    %c0_2 = arith.constant 0 : index
    %c0_3 = arith.constant 0 : index
    %2 = vector.load %arg1[%c0_1, %c0_2, %c0_3] : memref<1x16x64xbf16, #tpu.memory_space<vmem>>, vector<1x16x64xbf16>
    %3 = vector.shape_cast %2 : vector<1x16x64xbf16> to vector<16x64xbf16>
    %c1 = arith.constant 1 : index
    %c4 = arith.constant 4 : index
    %4 = vector.load %arg9[%c1, %c4] : memref<18x72xbf16, #tpu.memory_space<vmem>>, vector<16x64xbf16>
    tpu.vector_store %arg9[%c1, %c4], %3 {strides = array<i32>} : memref<18x72xbf16, #tpu.memory_space<vmem>>, vector<16x64xbf16>,
    %cst_4 = arith.constant 0.000000e+00 : f32
    %5 = vector.broadcast %cst_4 : f32 to vector<16x128xf32>
    %c0_5 = arith.constant 0 : index
    %c0_6 = arith.constant 0 : index
    %6 = vector.load %arg9[%c0_5, %c0_6] : memref<18x72xbf16, #tpu.memory_space<vmem>>, vector<16x72xbf16>
    %c0_7 = arith.constant 0 : index
    %c0_8 = arith.constant 0 : index
    %c0_9 = arith.constant 0 : index
    %7 = vector.load %arg2[%c0_7, %c0_8, %c0_9] : memref<3x72x128xbf16, #tpu.memory_space<vmem>>, vector<1x72x128xbf16>
    %8 = vector.shape_cast %7 : vector<1x72x128xbf16> to vector<72x128xbf16>
    %cst_10 = arith.constant dense<0.000000e+00> : vector<16x128xf32>
    %9 = tpu.matmul %6, %8, %cst_10 {dimension_numbers = #tpu.dot_dimension_numbers<[1], [0], [0], [1], [0, 0, 1, 1], [], []>} : vector<16x72xbf16>, vector<72x128xbf16>, vector<16x128xf32> -> vector<16x128xf32>
    %10 = arith.addf %5, %9 : vector<16x128xf32>
    %c1_11 = arith.constant 1 : index
    %c0_12 = arith.constant 0 : index
    %11 = vector.load %arg9[%c1_11, %c0_12] : memref<18x72xbf16, #tpu.memory_space<vmem>>, vector<16x72xbf16>
    %c1_13 = arith.constant 1 : index
    %c0_14 = arith.constant 0 : index
    %c0_15 = arith.constant 0 : index
    %12 = vector.load %arg2[%c1_13, %c0_14, %c0_15] : memref<3x72x128xbf16, #tpu.memory_space<vmem>>, vector<1x72x128xbf16>
    %13 = vector.shape_cast %12 : vector<1x72x128xbf16> to vector<72x128xbf16>
    %cst_16 = arith.constant dense<0.000000e+00> : vector<16x128xf32>
    %14 = tpu.matmul %11, %13, %cst_16 {dimension_numbers = #tpu.dot_dimension_numbers<[1], [0], [0], [1], [0, 0, 1, 1], [], []>} : vector<16x72xbf16>, vector<72x128xbf16>, vector<16x128xf32> -> vector<16x128xf32>
    %15 = arith.addf %10, %14 : vector<16x128xf32>
    %c2 = arith.constant 2 : index
    %c0_17 = arith.constant 0 : index
    %16 = vector.load %arg9[%c2, %c0_17] : memref<18x72xbf16, #tpu.memory_space<vmem>>, vector<16x72xbf16>
    %c2_18 = arith.constant 2 : index
    %c0_19 = arith.constant 0 : index
    %c0_20 = arith.constant 0 : index
    %17 = vector.load %arg2[%c2_18, %c0_19, %c0_20] : memref<3x72x128xbf16, #tpu.memory_space<vmem>>, vector<1x72x128xbf16>
    %18 = vector.shape_cast %17 : vector<1x72x128xbf16> to vector<72x128xbf16>
    %cst_21 = arith.constant dense<0.000000e+00> : vector<16x128xf32>
    %19 = tpu.matmul %16, %18, %cst_21 {dimension_numbers = #tpu.dot_dimension_numbers<[1], [0], [0], [1], [0, 0, 1, 1], [], []>} : vector<16x72xbf16>, vector<72x128xbf16>, vector<16x128xf32> -> vector<16x128xf32>
    %20 = arith.addf %15, %19 : vector<16x128xf32>
    %c0_22 = arith.constant 0 : index
    %c0_23 = arith.constant 0 : index
    %21 = vector.load %arg3[%c0_22, %c0_23] : memref<1x128xf32, #tpu.memory_space<vmem>>, vector<1x128xf32>
    %22 = vector.broadcast %21 : vector<1x128xf32> to vector<16x128xf32>
    %23 = arith.mulf %20, %22 : vector<16x128xf32>
    %c0_24 = arith.constant 0 : index
    %c0_25 = arith.constant 0 : index
    %24 = vector.load %arg4[%c0_24, %c0_25] : memref<1x128xf32, #tpu.memory_space<vmem>>, vector<1x128xf32>
    %25 = vector.broadcast %24 : vector<1x128xf32> to vector<16x128xf32>
    %26 = arith.addf %23, %25 : vector<16x128xf32>
    %cst_26 = arith.constant 0.000000e+00 : f32
    %27 = vector.broadcast %cst_26 : f32 to vector<16x128xf32>
    %28 = arith.maximumf %26, %27 : vector<16x128xf32>
    %cst_27 = arith.constant 0.000000e+00 : bf16
    %29 = vector.broadcast %cst_27 : bf16 to vector<18x144xbf16>
    %c0_28 = arith.constant 0 : index
    %c0_29 = arith.constant 0 : index
    %30 = vector.load %arg10[%c0_28, %c0_29] : memref<18x144xbf16, #tpu.memory_space<vmem>>, vector<18x144xbf16>
    tpu.vector_store %arg10[%c0_28, %c0_29], %29 {strides = array<i32>} : memref<18x144xbf16, #tpu.memory_space<vmem>>, vector<18x144xbf16>,
    %31 = arith.truncf %28 : vector<16x128xf32> to vector<16x128xbf16>
    %c1_30 = arith.constant 1 : index
    %c8 = arith.constant 8 : index
    %32 = vector.load %arg10[%c1_30, %c8] : memref<18x144xbf16, #tpu.memory_space<vmem>>, vector<16x128xbf16>
    tpu.vector_store %arg10[%c1_30, %c8], %31 {strides = array<i32>} : memref<18x144xbf16, #tpu.memory_space<vmem>>, vector<16x128xbf16>,
    %cst_31 = arith.constant 0.000000e+00 : f32
    %33 = vector.broadcast %cst_31 : f32 to vector<16x128xf32>
    %c0_32 = arith.constant 0 : index
    %c0_33 = arith.constant 0 : index
    %34 = vector.load %arg10[%c0_32, %c0_33] : memref<18x144xbf16, #tpu.memory_space<vmem>>, vector<16x144xbf16>
    %c0_34 = arith.constant 0 : index
    %c0_35 = arith.constant 0 : index
    %c0_36 = arith.constant 0 : index
    %35 = vector.load %arg5[%c0_34, %c0_35, %c0_36] : memref<3x144x128xbf16, #tpu.memory_space<vmem>>, vector<1x144x128xbf16>
    %36 = vector.shape_cast %35 : vector<1x144x128xbf16> to vector<144x128xbf16>
    %cst_37 = arith.constant dense<0.000000e+00> : vector<16x128xf32>
    %37 = tpu.matmul %34, %36, %cst_37 {dimension_numbers = #tpu.dot_dimension_numbers<[1], [0], [0], [1], [0, 0, 1, 1], [], []>} : vector<16x144xbf16>, vector<144x128xbf16>, vector<16x128xf32> -> vector<16x128xf32>
    %38 = arith.addf %33, %37 : vector<16x128xf32>
    %c1_38 = arith.constant 1 : index
    %c0_39 = arith.constant 0 : index
    %39 = vector.load %arg10[%c1_38, %c0_39] : memref<18x144xbf16, #tpu.memory_space<vmem>>, vector<16x144xbf16>
    %c1_40 = arith.constant 1 : index
    %c0_41 = arith.constant 0 : index
    %c0_42 = arith.constant 0 : index
    %40 = vector.load %arg5[%c1_40, %c0_41, %c0_42] : memref<3x144x128xbf16, #tpu.memory_space<vmem>>, vector<1x144x128xbf16>
    %41 = vector.shape_cast %40 : vector<1x144x128xbf16> to vector<144x128xbf16>
    %cst_43 = arith.constant dense<0.000000e+00> : vector<16x128xf32>
    %42 = tpu.matmul %39, %41, %cst_43 {dimension_numbers = #tpu.dot_dimension_numbers<[1], [0], [0], [1], [0, 0, 1, 1], [], []>} : vector<16x144xbf16>, vector<144x128xbf16>, vector<16x128xf32> -> vector<16x128xf32>
    %43 = arith.addf %38, %42 : vector<16x128xf32>
    %c2_44 = arith.constant 2 : index
    %c0_45 = arith.constant 0 : index
    %44 = vector.load %arg10[%c2_44, %c0_45] : memref<18x144xbf16, #tpu.memory_space<vmem>>, vector<16x144xbf16>
    %c2_46 = arith.constant 2 : index
    %c0_47 = arith.constant 0 : index
    %c0_48 = arith.constant 0 : index
    %45 = vector.load %arg5[%c2_46, %c0_47, %c0_48] : memref<3x144x128xbf16, #tpu.memory_space<vmem>>, vector<1x144x128xbf16>
    %46 = vector.shape_cast %45 : vector<1x144x128xbf16> to vector<144x128xbf16>
    %cst_49 = arith.constant dense<0.000000e+00> : vector<16x128xf32>
    %47 = tpu.matmul %44, %46, %cst_49 {dimension_numbers = #tpu.dot_dimension_numbers<[1], [0], [0], [1], [0, 0, 1, 1], [], []>} : vector<16x144xbf16>, vector<144x128xbf16>, vector<16x128xf32> -> vector<16x128xf32>
    %48 = arith.addf %43, %47 : vector<16x128xf32>
    %c0_50 = arith.constant 0 : index
    %c0_51 = arith.constant 0 : index
    %49 = vector.load %arg6[%c0_50, %c0_51] : memref<1x128xf32, #tpu.memory_space<vmem>>, vector<1x128xf32>
    %50 = vector.broadcast %49 : vector<1x128xf32> to vector<16x128xf32>
    %51 = arith.mulf %48, %50 : vector<16x128xf32>
    %c0_52 = arith.constant 0 : index
    %c0_53 = arith.constant 0 : index
    %52 = vector.load %arg7[%c0_52, %c0_53] : memref<1x128xf32, #tpu.memory_space<vmem>>, vector<1x128xf32>
    %53 = vector.broadcast %52 : vector<1x128xf32> to vector<16x128xf32>
    %54 = arith.addf %51, %53 : vector<16x128xf32>
    %cst_54 = arith.constant 0.000000e+00 : f32
    %55 = vector.broadcast %cst_54 : f32 to vector<16x128xf32>
    %56 = arith.maximumf %54, %55 : vector<16x128xf32>
    %c0_55 = arith.constant 0 : index
    %c0_56 = arith.constant 0 : index
    %c0_57 = arith.constant 0 : index
    %57 = vector.load %arg8[%c0_55, %c0_56, %c0_57] : memref<1x16x128xf32, #tpu.memory_space<vmem>>, vector<1x16x128xf32>
    %58 = vector.shape_cast %57 : vector<1x16x128xf32> to vector<16x128xf32>
    %59 = vector.shape_cast %56 : vector<16x128xf32> to vector<1x16x128xf32>
    tpu.vector_store %arg8[%c0_55, %c0_56, %c0_57], %59 {strides = array<i32>} : memref<1x16x128xf32, #tpu.memory_space<vmem>>, vector<1x16x128xf32>,
    return
  }
  func.func @transform_0(%arg0: i32) -> (i32, i32, i32) {
    %c0_i32 = arith.constant 0 : i32
    %c0_i32_0 = arith.constant 0 : i32
    %c0_i32_1 = arith.constant 0 : i32
    return %arg0, %c0_i32, %c0_i32_0 : i32, i32, i32
  }
  func.func @transform_1(%arg0: i32) -> (i32, i32, i32) {
    %c0_i32 = arith.constant 0 : i32
    %c0_i32_0 = arith.constant 0 : i32
    %c0_i32_1 = arith.constant 0 : i32
    %c0_i32_2 = arith.constant 0 : i32
    return %c0_i32, %c0_i32_0, %c0_i32_1 : i32, i32, i32
  }
  func.func @transform_2(%arg0: i32) -> (i32, i32) {
    %c0_i32 = arith.constant 0 : i32
    %c0_i32_0 = arith.constant 0 : i32
    %c0_i32_1 = arith.constant 0 : i32
    return %c0_i32, %c0_i32_0 : i32, i32
  }
  func.func @transform_3(%arg0: i32) -> (i32, i32) {
    %c0_i32 = arith.constant 0 : i32
    %c0_i32_0 = arith.constant 0 : i32
    %c0_i32_1 = arith.constant 0 : i32
    return %c0_i32, %c0_i32_0 : i32, i32
  }
  func.func @transform_4(%arg0: i32) -> (i32, i32, i32) {
    %c0_i32 = arith.constant 0 : i32
    %c0_i32_0 = arith.constant 0 : i32
    %c0_i32_1 = arith.constant 0 : i32
    %c0_i32_2 = arith.constant 0 : i32
    return %c0_i32, %c0_i32_0, %c0_i32_1 : i32, i32, i32
  }
  func.func @transform_5(%arg0: i32) -> (i32, i32) {
    %c0_i32 = arith.constant 0 : i32
    %c0_i32_0 = arith.constant 0 : i32
    %c0_i32_1 = arith.constant 0 : i32
    return %c0_i32, %c0_i32_0 : i32, i32
  }
  func.func @transform_6(%arg0: i32) -> (i32, i32) {
    %c0_i32 = arith.constant 0 : i32
    %c0_i32_0 = arith.constant 0 : i32
    %c0_i32_1 = arith.constant 0 : i32
    return %c0_i32, %c0_i32_0 : i32, i32
  }
  func.func @transform_7(%arg0: i32) -> (i32, i32, i32) {
    %c0_i32 = arith.constant 0 : i32
    %c0_i32_0 = arith.constant 0 : i32
    %c0_i32_1 = arith.constant 0 : i32
    return %arg0, %c0_i32, %c0_i32_0 : i32, i32, i32
  }
}

</mosaic_0001>

<bundles_post_ra>
// kernel: tile.23
= control target key start
LH: loop header
LB: loop body
LE: loop exit
PB: predicated region body
PF: predicated region fallthrough
CT: control target
= control target key end

     0   :  { %s28_s0 = inlined_call_operand.vmem [shape: f32[8], index: 0, kind: input, shape index: {}]   ;;  %s29_s1 = inlined_call_operand.vmem [shape: f32[16,8], index: 1, kind: output, shape index: {}]  }
   0x1   :  { %v4_v0 = vld [vmem:[%s28_s0] ss:$0 sm:$0xff] }
   0x2   :  { %5 = vst [vmem:[%s29_s1] sm:$0xff] %v4_v0  ;;  %8 = vst [vmem:[%s29_s1 + $0x8] sm:$0xff] %v4_v0 }

// kernel: tile.24
= control target key start
LH: loop header
LB: loop body
LE: loop exit
PB: predicated region body
PF: predicated region fallthrough
CT: control target
= control target key end

     0   :  { %s131_s10 = smov 120   ;;  %s132_s11 = smov 104   ;;  %vm3_vm0 = vcmask 64512   ;;  %vm9_vm1 = vcmask 1048512   ;;  %vm15_vm2 = vcmask 982912   ;;  %vm21_vm3 = vcmask 917312   ;;  %s207_s0 = inlined_call_operand.vmem [shape: f32[16,8], index: 0, kind: input, shape index: {}]   ;;  %s208_s1 = inlined_call_operand.vmem [shape: f32[1,128], index: 1, kind: output, shape index: {}]  }
   0x1   :  { %v101_v0 = vld [vmem:[%s207_s0 + $0xf] sm:$0x1]   ;;  %v103_v1 = vld [vmem:[%s207_s0 + $0xd] sm:$0x1]   ;;  %v102_v2 = vld [vmem:[%s207_s0 + $0xe] sm:$0x1]  }
   0x2   :  { %7 = vrot.lane.b32.xlu0 %v101_v0, %s131_s10  ;;  %19 = vrot.lane.b32.xlu1 %v103_v1, %s132_s11  ;;  %v104_v3 = vld [vmem:[%s207_s0 + $0xc] sm:$0x1]   ;;  %s133_s16 = smov 112   ;;  %s134_s17 = smov 96   ;;  %v105_v4 = vld [vmem:[%s207_s0 + $0xb] sm:$0x1]  }
   0x3   :  { %v106_v5 = vld [vmem:[%s207_s0 + $0xa] sm:$0x1]   ;;  %v2_v6 = vld [vmem:[%s207_s0] sm:$0x1]   ;;  %s135_s24 = smov 88   ;;  %s136_s25 = smov 80  }
   0x4   :  { %4 = vst.msk [vmem:[#allocation0] sm:$0x1] %vm3_vm0, %v2_v6   ;;  %v107_v7 = vld [vmem:[%s207_s0 + $0x9] sm:$0x1]   ;;  %v108_v8 = vld [vmem:[%s207_s0 + $0x8] sm:$0x1]  }
   0x5   :  { %s137_s30 = smov 72   ;;  %s138_s2 = smov 64   ;;  %v109_v9 = vld [vmem:[%s207_s0 + $0x7] sm:$0x1]   ;;  %v110_v10 = vld [vmem:[%s207_s0 + $0x6] sm:$0x1]  }
   0x6   :  { %13 = vrot.lane.b32.xlu0 %v102_v2, %s133_s16  ;;  %25 = vrot.lane.b32.xlu1 %v104_v3, %s134_s17  ;;  %s139_s7 = smov 56   ;;  %s140_s8 = smov 48   ;;  %v111_v11 = vld [vmem:[%s207_s0 + $0x5] sm:$0x1]   ;;  %v112_v12 = vld [vmem:[%s207_s0 + $0x4] sm:$0x1]  }
   0x7   :  { %s141_s13 = smov 40   ;;  %s142_s14 = smov 32   ;;  %v113_v13 = vld [vmem:[%s207_s0 + $0x3] sm:$0x1]   ;;  %v114_v14 = vld [vmem:[%s207_s0 + $0x2] sm:$0x1]  }
   0x8   :  { %s143_s19 = smov 24   ;;  %s144_s20 = smov 16   ;;  %v115_v15 = vld [vmem:[%s207_s0 + $0x1] sm:$0x1]   ;;  %vm27_vm4 = vcmask 851712   ;;  %vm33_vm5 = vcmask 786112  }
   0x9   :  { %s145_s0 = smov 8   ;;  %vm39_vm6 = vcmask 720512   ;;  %vm45_vm7 = vcmask 654912   ;;  %vm51_vm8 = vcmask 589312   ;;  %vm57_vm9 = vcmask 523712  }
   0xa   :  { %31 = vrot.lane.b32.xlu0 %v105_v4, %s135_s24  ;;  %37 = vrot.lane.b32.xlu1 %v106_v5, %s136_s25  ;;  %vm63_vm10 = vcmask 458112   ;;  %vm69_vm11 = vcmask 392512   ;;  %vm75_vm12 = vcmask 326912   ;;  %vm81_vm13 = vcmask 261312  }
   0xb   :  { %vm87_vm14 = vcmask 195712   ;;  %vm93_vm15 = vcmask 130112  }
   0xe   :  { %43 = vrot.lane.b32.xlu0 %v107_v7, %s137_s30  ;;  %49 = vrot.lane.b32.xlu1 %v108_v8, %s138_s2 }
  0x12   :  { %55 = vrot.lane.b32.xlu0 %v109_v9, %s139_s7  ;;  %61 = vrot.lane.b32.xlu1 %v110_v10, %s140_s8 }
  0x16   :  { %67 = vrot.lane.b32.xlu0 %v111_v11, %s141_s13  ;;  %73 = vrot.lane.b32.xlu1 %v112_v12, %s142_s14 }
  0x1a   :  { %79 = vrot.lane.b32.xlu0 %v113_v13, %s143_s19  ;;  %85 = vrot.lane.b32.xlu1 %v114_v14, %s144_s20 }
  0x1e   :  { %91 = vrot.lane.b32.xlu0 %v115_v15, %s145_s0 }
  0x74   :  { %v8_v16 = vpop.permute.xlu0 %7   ;;  %v20_v17 = vpop.permute.xlu1 %19  }
  0x75   :  { %10 = vst.msk [vmem:[#allocation0] sm:$0x1] %vm9_vm1, %v8_v16  }
  0x78   :  { %v14_v18 = vpop.permute.xlu0 %13   ;;  %v26_v19 = vpop.permute.xlu1 %25  }
  0x79   :  { %16 = vst.msk [vmem:[#allocation0] sm:$0x1] %vm15_vm2, %v14_v18  }
  0x7a   :  { %22 = vst.msk [vmem:[#allocation0] sm:$0x1] %vm21_vm3, %v20_v17  }
  0x7b   :  { %28 = vst.msk [vmem:[#allocation0] sm:$0x1] %vm27_vm4, %v26_v19  }
  0x7c   :  { %v32_v20 = vpop.permute.xlu0 %31   ;;  %v38_v21 = vpop.permute.xlu1 %37  }
  0x7d   :  { %34 = vst.msk [vmem:[#allocation0] sm:$0x1] %vm33_vm5, %v32_v20  }
  0x7e   :  { %40 = vst.msk [vmem:[#allocation0] sm:$0x1] %vm39_vm6, %v38_v21  }
  0x80   :  { %v44_v22 = vpop.permute.xlu0 %43   ;;  %v50_v23 = vpop.permute.xlu1 %49  }
  0x81   :  { %46 = vst.msk [vmem:[#allocation0] sm:$0x1] %vm45_vm7, %v44_v22  }
  0x82   :  { %52 = vst.msk [vmem:[#allocation0] sm:$0x1] %vm51_vm8, %v50_v23  }
  0x84   :  { %v56_v24 = vpop.permute.xlu0 %55   ;;  %v62_v25 = vpop.permute.xlu1 %61  }
  0x85   :  { %58 = vst.msk [vmem:[#allocation0] sm:$0x1] %vm57_vm9, %v56_v24  }
  0x86   :  { %64 = vst.msk [vmem:[#allocation0] sm:$0x1] %vm63_vm10, %v62_v25  }
  0x88   :  { %v68_v26 = vpop.permute.xlu0 %67   ;;  %v74_v27 = vpop.permute.xlu1 %73  }
  0x89   :  { %70 = vst.msk [vmem:[#allocation0] sm:$0x1] %vm69_vm11, %v68_v26  }
  0x8a   :  { %76 = vst.msk [vmem:[#allocation0] sm:$0x1] %vm75_vm12, %v74_v27  }
  0x8c   :  { %v80_v28 = vpop.permute.xlu0 %79   ;;  %v86_v29 = vpop.permute.xlu1 %85  }
  0x8d   :  { %82 = vst.msk [vmem:[#allocation0] sm:$0x1] %vm81_vm13, %v80_v28  }
  0x8e   :  { %88 = vst.msk [vmem:[#allocation0] sm:$0x1] %vm87_vm14, %v86_v29  }
  0x90   :  { %v92_v30 = vpop.permute.xlu0 %91  }
  0x91   :  { %94 = vst.msk [vmem:[#allocation0] sm:$0x1] %vm93_vm15, %v92_v30  }
  0x98   :  { %v98_v31 = vld [vmem:[#allocation0] sm:$0x1] }
  0x99   :  { %100 = vst [vmem:[%s208_s1] sm:$0x1] %v98_v31 }

// kernel: conv3x3_forward.1
= control target key start
LH: loop header
LB: loop body
LE: loop exit
PB: predicated region body
PF: predicated region fallthrough
CT: control target
= control target key end

     0   :  { %s1507_s24 = smov 0   ;;  %s1763_s0 = inlined_call_operand.vmem [shape: bf16[2,16,64], index: 0, kind: input, shape index: {}]   ;;  %s1764_s1 = inlined_call_operand.vmem [shape: bf16[3,72,128], index: 1, kind: input, shape index: {}]   ;;  %s1765_s2 = inlined_call_operand.vmem [shape: f32[1,128], index: 2, kind: input, shape index: {}]   ;;  %s1766_s3 = inlined_call_operand.vmem [shape: f32[1,128], index: 3, kind: input, shape index: {}]   ;;  %s1767_s4 = inlined_call_operand.vmem [shape: bf16[3,144,128], index: 4, kind: input, shape index: {}]   ;;  %s1768_s5 = inlined_call_operand.vmem [shape: f32[1,128], index: 5, kind: input, shape index: {}]   ;;  %s1769_s6 = inlined_call_operand.vmem [shape: f32[1,128], index: 6, kind: input, shape index: {}]   ;;  %s1770_s7 = inlined_call_operand.vmem [shape: f32[2,16,128], index: 7, kind: output, shape index: {}]  }
   0x1 LB: > { %s1188_s25 = sadd.s32 4294967295, %s1460_s24   ;;  %p1192_p0 = scmp.ge.s32.totalorder %s1460_s24, 1  ;;  %s1460_s24 = sphi %s1507_s24, %s17_s24  }
   0x2   : > { %p237_p1 = scmp.lt.s32.totalorder %s1460_s24, 3 }
   0x4   : > { %p238_p2 = pnand %p1192_p0, %p237_p1 }
   0x5   : > { %p269_p3 = scmp.lt.s32.totalorder (!%p238_p2), %s1188_s25, 1  ;;  %vm280_vm0 = vcmask (!%p238_p2), 584704   ;;  %v1462_v0 = vmov (!%p238_p2), 0.0   ;;  %v1405_v1 = vld [vmem:[%s1764_s1] sm:$0xff] (!%p238_p2)   ;;  %vm287_vm1 = vsmask.f32 (!%p238_p2), 256 }
   0x6   : > { %241 = sbr.rel (%p238_p2) target bundleno = 791 (0x317), region = 48  ;;  %1352 = vmatprep.subr.bf16.mxu0 (!%p238_p2), %v1462_v0  ;;  %1338 = vmatprep.subr.bf16.mxu1 (!%p238_p2), %v1462_v0  ;;  %v1406_v2 = vld [vmem:[%s1764_s1 + $0x8] sm:$0xff] (!%p238_p2)   ;;  %v1463_v3 = vmov (!%p238_p2), 0   ;;  %vm283_vm2 = vcmask (!%p238_p2), 581632   ;;  %vm288_vm3 = vsmask.f32 (!%p238_p2), 4368 }
   0x7   : > { %1353 = vmatpush3.bf16.msra.mxu0 (!%p238_p2), %v1405_v1  ;;  %281 = vst.msk [vmem:[#allocation2] sm:$0xf] (!%p238_p2), %vm280_vm0, %v1463_v3  ;;  %282 = vst.msk [vmem:[#allocation2 + $0x4] sm:$0xf] (!%p238_p2), %vm280_vm0, %v1463_v3  ;;  %v1407_v4 = vld [vmem:[%s1764_s1 + $0x24] sm:$0xff] (!%p238_p2)   ;;  %vm1464_vm4 = vmmov (!%p238_p2), 0  }
   0x8   : > { %1354 = vmatprep.subr.bf16.mxu0 (!%p238_p2), %v1462_v0  ;;  %284 = vst.msk [vmem:[#allocation2 + $0x8] sm:$0x1] (!%p238_p2), %vm283_vm2, %v1463_v3  ;;  %1362 = vmatprep.mubr.msk.bf16.mxu0 (!%p238_p2), %vm1464_vm4, %v1462_v0  ;;  %v1408_v11 = vld [vmem:[%s1764_s1 + $0x10] sm:$0xff] (!%p238_p2)   ;;  %vm1550_vm5 = vmor (!%p238_p2), %vm287_vm1, %vm288_vm3  ;;  %v1410_v20 = vld [vmem:[%s1764_s1 + $0x18] sm:$0xff] (!%p238_p2)   ;;  %s1465_s23 = smov (!%p238_p2), 4   ;;  %vm403_vm6 = vcmask (!%p238_p2), 1043456  }
   0x9   : > { %1348 = vmatprep.mubr.msk.bf16.mxu1 (!%p238_p2), %vm1464_vm4, %v1462_v0  ;;  %1339 = vmatpush3.bf16.msra.mxu1 (!%p238_p2), %v1407_v4  ;;  %v1409_v12 = vld [vmem:[%s1764_s1 + $0x2c] sm:$0xff] (!%p238_p2)   ;;  %v1411_v21 = vld [vmem:[%s1764_s1 + $0x34] sm:$0xff] (!%p238_p2)   ;;  %v1412_v22 = vld [vmem:[%s1764_s1 + $0x20] ss:$0 sps:$4 sm:$0xff] (!%p238_p2)   ;;  %vm316_vm7 = vcmask (!%p238_p2), 551968   ;;  %vm324_vm9 = vcmask (!%p238_p2), 548896  }
   0xa   : > { %1340 = vmatprep.subr.bf16.mxu1 (!%p238_p2), %v1462_v0  ;;  %v1413_v24 = vld [vmem:[%s1764_s1 + $0x3c] sm:$0xff] (!%p238_p2)   ;;  %v478_v25 = vsel (!%p238_p2), %vm403_vm6, %v1412_v22, 0  ;;  %v1417_v26 = vld [vmem:[%s1764_s1 + $0x44] ss:$0 sps:$4 sm:$0xff] (!%p238_p2)   ;;  %vm317_vm8 = vsmask.f32 (!%p238_p2), 7938  ;;  %vm325_vm11 = vmand (!%p238_p2), %vm324_vm9, %vm287_vm1 }
   0xb   : > { %1355 = vmatpush3.bf16.msra.mxu0 (!%p238_p2), %v1406_v2  ;;  %v405_v27 = vsel (!%p238_p2), %vm403_vm6, %v1417_v26, 0  ;;  %vm318_vm10 = vmand (!%p238_p2), %vm316_vm7, %vm317_vm8  ;;  %vm399_vm12 = vcmask (!%p238_p2), 588800   ;;  %v1416_v38 = vld [vmem:[%s1764_s1 + $0x48] sm:$0xff] (!%p238_p2)   ;;  %v1418_v42 = vld [vmem:[%s1764_s1 + $0x50] sm:$0xff] (!%p238_p2)   ;;  %vm359_vm13 = vsmask.f32 (!%p238_p2), 7424 }
   0xc   : > { %1356 = vmatprep.subr.bf16.mxu0 (!%p238_p2), %v1462_v0  ;;  %v1420_v47 = vld [vmem:[%s1764_s1 + $0x58] sm:$0xff] (!%p238_p2)   ;;  %v1421_v49 = vld [vmem:[%s1764_s1 + $0x60] sm:$0xff] (!%p238_p2)   ;;  %v1422_v51 = vld [vmem:[%s1764_s1 + $0x68] ss:$0 sps:$4 sm:$0xff] (!%p238_p2)   ;;  %vm535_vm14 = vcmask (!%p238_p2), 1046528   ;;  %vm635_vm15 = vcmask (!%p238_p2), 130052  }
   0xd   : > { %s1776_s25 = smov (!%p269_p3, %s1188_s25), 1  ;;  %1341 = vmatpush3.bf16.msra.mxu1 %v1409_v12  ;;  %v570_v53 = vsel %vm403_vm6, %v1422_v51, 0  ;;  %v1423_v57 = vld [vmem:[%s1767_s4] sm:$0xff]   ;;  %v1425_v58 = vld [vmem:[%s1767_s4 + $0x48] sm:$0xff]   ;;  %v1427_v60 = vld [vmem:[%s1767_s4 + $0x50] sm:$0xff]   ;;  %vm639_vm2 = vcmask 1040384  }
   0xe   : > { %s1316_s30 = sshll.u32 %s1776_s25, 3  ;;  %1342 = vmatprep.subr.bf16.mxu1 %v1462_v0  ;;  %v319_v28 = vld [vmem:[#allocation2] sm:$0xf]  ;;  %v1424_v59 = vld [vmem:[%s1767_s4 + $0x8] sm:$0xff]   ;;  %vm636_vm0 = vmor %vm635_vm15, %vm403_vm6  ;;  %vm640_vm3 = vcmask 126980   ;;  %s1466_s11 = smov 8  }
   0xf   : > { %s273_s10 = scalar_lea.vmem %s1763_s0, %s1316_s30  ;;  %1357 = vmatpush3.bf16.msra.mxu0 %v1408_v11  ;;  %v326_v29 = vld [vmem:[#allocation2 + $0x8] sm:$0x1]  ;;  %637 = vst.msk [vmem:[#allocation3] sm:$0xff] %vm636_vm0, %v1463_v3  ;;  %638 = vst.msk [vmem:[#allocation3 + $0x8] sm:$0xff] %vm636_vm0, %v1463_v3  ;;  %v1426_v61 = vld [vmem:[%s1767_s4 + $0x10] sm:$0xff]   ;;  %vm682_vm6 = vcmask 1043520  }
  0x10   : > { %v285_v5 = vld [vmem:[%s273_s10] sm:$0xf]  ;;  %v286_v6 = vld [vmem:[%s273_s10 + $0x4] sm:$0xf]  ;;  %1358 = vmatprep.subr.bf16.mxu0 %v1462_v0  ;;  %v1429_v62 = vld [vmem:[%s1767_s4 + $0x58] sm:$0xff]   ;;  %vm675_vm0 = vcmask 64512  }
  0x11   : > { %v291_v7 = vshrl.u32 %v285_v5, 16  ;;  %v294_v8 = vshll.u32 %v285_v5, 16  ;;  %v299_v9 = vshrl.u32 %v286_v6, 16  ;;  %v302_v10 = vshll.u32 %v286_v6, 16  ;;  %1343 = vmatpush3.bf16.msra.mxu1 %v1411_v21  ;;  %v1428_v63 = vld [vmem:[%s1767_s4 + $0x18] sm:$0xff]   ;;  %v1433_v22 = vld [vmem:[%s1767_s4 + $0x68] sm:$0xff]   ;;  %vm683_vm9 = vmand %vm682_vm6, %vm317_vm8 }
  0x12   : > { %1344 = vmatprep.subr.bf16.mxu1 %v1462_v0  ;;  %vm698_vm15 = vsmask.f32 4352  ;;  %s1317_s17 = sshll.u32 %s1776_s25, 4 }
  0x13   : > { %v293_v13 = vrot.slane %v291_v7, 7  ;;  %v301_v14 = vrot.slane %v299_v9, 7  ;;  %1359 = vmatpush3.bf16.msra.mxu0 %v1410_v20  ;;  %v1236_v7 = vld [vmem:[%s1765_s2] ss:$0 sm:$0xff]  ;;  %s278_s20 = scalar_lea.vmem %s1770_s7, %s1317_s17 }
  0x14   : > { %1360 = vmatprep.subr.bf16.mxu0 %v1462_v0 }
  0x15   : > { %v296_v15 = vor.u32 %v294_v8, %v293_v13  ;;  %v297_v16 = vrot.slane %v293_v13, 4  ;;  %v306_v17 = vrot.slane %v301_v14, 4  ;;  %v304_v18 = vor.u32 %v302_v10, %v301_v14  ;;  %1345 = vmatpush3.bf16.msra.mxu1 %v1413_v24  ;;  %v1237_v10 = vld [vmem:[%s1766_s3] ss:$0 sm:$0xff] }
  0x16   : > { %1346 = vmatprep.subr.bf16.mxu1 %v1462_v0 }
  0x17   : > { %307 = vrot.lane.b32.xlu0 %v296_v15, %s1465_s23  ;;  %311 = vrot.lane.b32.xlu1 %v306_v17, %s1465_s23  ;;  %v305_v23 = vsel %vm1550_vm5, %v297_v16, %v304_v18  ;;  %v1431_v15 = vld [vmem:[%s1767_s4 + $0x60] sm:$0xff]   ;;  %v1432_v16 = vld [vmem:[%s1767_s4 + $0x28] sm:$0xff]  }
  0x18   : > { %1361 = vmatpush3.bf16.msra.mxu0 %v478_v25 }
  0x19   : > { %1366 = vmatprep.subr.bf16.mxu0 %v1462_v0  ;;  %1347 = vmatpush3.bf16.msra.mxu1 %v405_v27 }
  0x1a   : > { %938 = vmatprep.subr.bf16.mxu1 %v1463_v3 }
  0x1b   : > { %309 = vrot.lane.b32.xlu0 %v305_v23, %s1465_s23  ;;  %v1434_v23 = vld [vmem:[%s1767_s4 + $0x30] sm:$0xff]  }
  0x89   : > { %v308_v30 = vpop.permute.xlu0 %307  ;;  %v312_v31 = vpop.permute.xlu1 %311 }
  0x8a   : > { %v320_v32 = vsel %vm318_vm10, %v308_v30, %v319_v28  ;;  %v327_v33 = vsel %vm325_vm11, %v312_v31, %v326_v29  ;;  %v1435_v28 = vld [vmem:[%s1767_s4 + $0x70] sm:$0xff]   ;;  %v1436_v29 = vld [vmem:[%s1767_s4 + $0x38] sm:$0xff]   ;;  %vm695_vm11 = vcmask 1040448  }
  0x8b   : > { %321 = vst [vmem:[#allocation2] sm:$0xf] %v320_v32  ;;  %328 = vst [vmem:[#allocation2 + $0x8] sm:$0x1] %v327_v33  ;;  %v1437_v33 = vld [vmem:[%s1767_s4 + $0x78] sm:$0xff]  }
  0x8d   : > { %v310_v34 = vpop.permute.xlu0 %309 }
  0x8e   : > { %323 = vst.msk [vmem:[#allocation2 + $0x4] sm:$0xf] %vm316_vm7, %v310_v34  ;;  %v1438_v34 = vld [vmem:[%s1767_s4 + $0x40] sm:$0xff]   ;;  %vm684_vm7 = vcmask 64516  }
  0x8f   : > { %vm693_vm8 = vmor %vm684_vm7, %vm682_vm6 }
  0x92   : > { %v1419_v35 = vld [vmem:[#allocation2 + $0x8] ss:$0 sps:$4 sm:$0x11]   ;;  %v329_v36 = vld [vmem:[#allocation2] sm:$0xf] }
  0x93   : > { %v368_v40 = vshll.u32 %v1419_v35, 16  ;;  %v521_v50 = vld [vmem:[#allocation2] sm:$0xe]  ;;  %v537_v55 = vrot.slane %v1419_v35, 1 }
  0x95   : > { %v330_v37 = vld [vmem:[#allocation2 + $0x4] sm:$0xf]  ;;  %v370_v45 = vrot.slane %v368_v40, 1 }
  0x96   : > { %v1206_v39 = vcombine.low %v329_v36, %v330_v37  ;;  %v1229_v52 = vcombine.low %v521_v50, %v330_v37 }
  0x98   : > { %1363 = vmatmul.mubr.msk.bf16.vlgmr.msra.gmra.mrb[0].mxu0 %vm399_vm12, %v1206_v39  ;;  %v363_v41 = vshll.u32 %v1206_v39, 16  ;;  %v361_v43 = vshrl.u32 %v1206_v39, 16  ;;  %v536_v54 = vrot.slane %v1229_v52, 1 }
  0x99   : > { %1367 = vmatpush3.bf16.msra.mxu0 %v1416_v38  ;;  %1376 = vmatprep.mubr.msk.bf16.mxu0 %vm1464_vm4, %v1462_v0  ;;  %vm641_vm4 = vmor %vm640_vm3, %vm639_vm2 }
  0x9a   : > { %1368 = vmatprep.subr.bf16.mxu0 %v1462_v0  ;;  %v365_v44 = vrot.slane %v363_v41, 1  ;;  %v538_v56 = vsel %vm535_vm14, %v536_v54, %v537_v55  ;;  %642 = vst.msk [vmem:[#allocation3 + $0x10] sm:$0x11] %vm641_vm4, %v1463_v3  ;;  %vm1697_vm3 = vmand %vm695_vm11, %vm287_vm1  ;;  %vm836_vm1 = vcmask 130048  }
  0x9c   : > { %v366_v46 = vor.u32 %v365_v44, %v361_v43  ;;  %v1441_v43 = vld [vmem:[%s1767_s4 + $0x88] sm:$0xff]  }
  0x9d   : > { %1369 = vmatpush3.bf16.msra.mxu0 %v1418_v42  ;;  %v1439_v42 = vld [vmem:[%s1767_s4 + $0x80] sm:$0xff]   ;;  %v688_v44 = vld [vmem:[#allocation3] sm:$0xff] }
  0x9e   : > { %v371_v48 = vsel %vm359_vm13, %v366_v46, %v370_v45  ;;  %1370 = vmatprep.subr.bf16.mxu0 %v1462_v0 }
  0x9f   : > { %1349 = vmatmul.mubr.msk.bf16.vlgmr.msra.gmra.mrb[0].mxu1 %vm399_vm12, %v371_v48 }
  0xa0   : > { %939 = vmatpush1.bf16.msra.mxu1 %v1423_v57 }
  0xa1   : > { %1371 = vmatpush3.bf16.msra.mxu0 %v1420_v47  ;;  %940 = vmatprep.subr.bf16.mxu1 %v1463_v3  ;;  %v701_v52 = vld [vmem:[#allocation3 + $0x10] sm:$0x11] }
  0xa2   : > { %1372 = vmatprep.subr.bf16.mxu0 %v1462_v0 }
  0xa4   : > { %941 = vmatpush1.bf16.msra.mxu1 %v1424_v59 }
  0xa5   : > { %1373 = vmatpush3.bf16.msra.mxu0 %v1421_v49  ;;  %942 = vmatprep.subr.bf16.mxu1 %v1463_v3 }
  0xa6   : > { %1374 = vmatprep.subr.bf16.mxu0 %v1462_v0  ;;  %v1430_v0 = vld [vmem:[%s1767_s4 + $0x20] sm:$0xff]  }
  0xa8   : > { %943 = vmatpush1.bf16.msra.mxu1 %v1426_v61  ;;  %v1440_v61 = vld [vmem:[%s1767_s4 + $0x90] sm:$0xff]  }
  0xa9   : > { %1375 = vmatpush3.bf16.msra.mxu0 %v570_v53  ;;  %944 = vmatprep.subr.bf16.mxu1 %v1463_v3 }
  0xaa   : > { %840 = vmatprep.subr.bf16.mxu0 %v1463_v3 }
  0xac   : > { %1377 = vmatmul.mubr.msk.bf16.vlgmr.msra.gmra.mrb[0].mxu0 %vm399_vm12, %v538_v56  ;;  %945 = vmatpush1.bf16.msra.mxu1 %v1428_v63  ;;  %vm697_vm12 = vcmask 61444  }
  0xad   : > { %841 = vmatpush1.bf16.msra.mxu0 %v1425_v58  ;;  %946 = vmatprep.subr.bf16.mxu1 %v1463_v3  ;;  %vm699_vm4 = vmand %vm697_vm12, %vm698_vm15 }
  0xae   : > { %842 = vmatprep.subr.bf16.mxu0 %v1463_v3 }
  0xb0   : > { %947 = vmatpush1.bf16.msra.mxu1 %v1430_v0 }
  0xb1   : > { %843 = vmatpush1.bf16.msra.mxu0 %v1427_v60  ;;  %948 = vmatprep.subr.bf16.mxu1 %v1463_v3 }
  0xb2   : > { %844 = vmatprep.subr.bf16.mxu0 %v1463_v3 }
  0xb4   : > { %949 = vmatpush1.bf16.msra.mxu1 %v1432_v16 }
  0xb5   : > { %845 = vmatpush1.bf16.msra.mxu0 %v1429_v62  ;;  %950 = vmatprep.subr.bf16.mxu1 %v1463_v3 }
  0xb6   : > { %846 = vmatprep.subr.bf16.mxu0 %v1463_v3 }
  0xb8   : > { %951 = vmatpush1.bf16.msra.mxu1 %v1434_v23  ;;  %v1447_v23 = vld [vmem:[%s1767_s4 + $0xa8] sm:$0xff]  }
  0xb9   : > { %847 = vmatpush1.bf16.msra.mxu0 %v1431_v15  ;;  %952 = vmatprep.subr.bf16.mxu1 %v1463_v3 }
  0xba   : > { %848 = vmatprep.subr.bf16.mxu0 %v1463_v3 }
  0xbc   : > { %953 = vmatpush1.bf16.msra.mxu1 %v1436_v29 }
  0xbd   : > { %849 = vmatpush1.bf16.msra.mxu0 %v1433_v22  ;;  %954 = vmatprep.subr.bf16.mxu1 %v1463_v3 }
  0xbe   : > { %850 = vmatprep.subr.bf16.mxu0 %v1463_v3 }
  0xc0   : > { %955 = vmatpush1.bf16.msra.mxu1 %v1438_v34 }
  0xc1   : > { %851 = vmatpush1.bf16.msra.mxu0 %v1435_v28  ;;  %1068 = vmatprep.subr.bf16.mxu1 %v1463_v3  ;;  %v1452_v28 = vld [vmem:[%s1767_s4 + $0xd0] sm:$0xff]  }
  0xc2   : > { %852 = vmatprep.subr.bf16.mxu0 %v1463_v3 }
  0xc5   : > { %853 = vmatpush1.bf16.msra.mxu0 %v1437_v33 }
  0xc6   : > { %854 = vmatprep.subr.bf16.mxu0 %v1463_v3 }
  0xc9   : > { %855 = vmatpush1.bf16.msra.mxu0 %v1439_v42 }
  0xca   : > { %856 = vmatprep.subr.bf16.mxu0 %v1463_v3 }
  0xcd   : > { %857 = vmatpush1.bf16.msra.mxu0 %v1441_v43 }
 0x172   : > { %v441_v1 = vpop.f32.mrb[0].mxu1 }
 0x173   : > { %v1350_v2 = vpop.f32.mrb[1].mxu1 }
 0x174   : > { %v444_v4 = vpop.f32.mrb[2].mxu1 }
 0x175   : > { %v1351_v5 = vpop.f32.mrb[3].mxu1 }
 0x17f   : > { %v606_v6 = vpop.f32.mrb[0].mxu0 }
 0x180   : > { %v1380_v8 = vadd.f32 %v606_v6, %v441_v1  ;;  %v1378_v9 = vpop.f32.mrb[1].mxu0  ;;  %v1442_v6 = vld [vmem:[%s1767_s4 + $0x98] sm:$0xff]  }
 0x181   : > { %v609_v11 = vpop.f32.mrb[2].mxu0 }
 0x182   : > { %v622_v12 = vmul.f32 %v1380_v8, %v1236_v7  ;;  %v1381_v13 = vadd.f32 %v609_v11, %v444_v4  ;;  %v1379_v14 = vpop.f32.mrb[3].mxu0 }
 0x184   : > { %v631_v17 = vadd.f32 %v1237_v10, %v622_v12  ;;  %v623_v18 = vmul.f32 %v1381_v13, %v1236_v7 }
 0x186   : > { %v633_v20 = vmax.f32 %v631_v17, 0.0  ;;  %v632_v21 = vadd.f32 %v1237_v10, %v623_v18 }
 0x188   : > { %v1318_v24 = vpack.c.bf16 %v633_v20, %v633_v20  ;;  %v634_v25 = vmax.f32 %v632_v21, 0.0  ;;  %v1446_v21 = vld [vmem:[%s1767_s4 + $0xa0] sm:$0xff]  }
 0x18a   : > { %v1319_v26 = vpack.c.bf16 %v634_v25, %v634_v25  ;;  %v650_v27 = vshrl.u32 %v1318_v24, 16  ;;  %v653_v32 = vshll.u32 %v1318_v24, 16  ;;  %v1448_v24 = vld [vmem:[%s1767_s4 + $0xb0] sm:$0xff]   ;;  %v1449_v25 = vld [vmem:[%s1767_s4 + $0xb8] sm:$0xff]  }
 0x18c   : > { %v658_v30 = vshrl.u32 %v1319_v26, 16  ;;  %v652_v31 = vrot.slane %v650_v27, 7  ;;  %v661_v36 = vshll.u32 %v1319_v26, 16  ;;  %v1450_v26 = vld [vmem:[%s1767_s4 + $0xc0] sm:$0xff]   ;;  %v1451_v27 = vld [vmem:[%s1767_s4 + $0xc8] sm:$0xff]  }
 0x18e   : > { %v660_v35 = vrot.slane %v658_v30, 7  ;;  %v655_v37 = vor.u32 %v653_v32, %v652_v31  ;;  %v656_v38 = vrot.slane %v652_v31, 4 }
 0x190   : > { %666 = vrot.lane.b32.xlu1 %v655_v37, %s1466_s11  ;;  %v663_v39 = vor.u32 %v661_v36, %v660_v35  ;;  %v665_v41 = vrot.slane %v660_v35, 4 }
 0x192   : > { %v664_v40 = vsel %vm1550_vm5, %v656_v38, %v663_v39  ;;  %vm685_vm5 = vsmask.f32 7954  ;;  %v1312_v38 = vld [vmem:[%s1768_s5] ss:$0 sm:$0xff] }
 0x193   : > { %668 = vrot.lane.b32.xlu0 %v664_v40, %s1466_s11  ;;  %vm686_vm10 = vmand %vm684_vm7, %vm685_vm5 }
 0x194   : > { %670 = vrot.lane.b32.xlu1 %v665_v41, %s1466_s11  ;;  %vm687_vm2 = vmor %vm686_vm10, %vm683_vm9 }
 0x195   : > { %vm700_vm5 = vmor %vm699_vm4, %vm1697_vm3 }
 0x202   : > { %v667_v19 = vpop.permute.xlu1 %666 }
 0x203   : > { %v672_v45 = vrot.slane %v667_v19, 4 }
 0x205   : > { %v676_v47 = vsel %vm675_vm0, %v672_v45, %v667_v19  ;;  %v669_v48 = vpop.permute.xlu0 %668 }
 0x206   : > { %v689_v49 = vsel %vm687_vm2, %v676_v47, %v688_v44  ;;  %v673_v50 = vrot.slane %v669_v48, 4  ;;  %v671_v51 = vpop.permute.xlu1 %670 }
 0x207   : > { %690 = vst [vmem:[#allocation3] sm:$0xff] %v689_v49  ;;  %v674_v53 = vrot.slane %v671_v51, 4 }
 0x208   : > { %v677_v54 = vsel %vm675_vm0, %v673_v50, %v669_v48 }
 0x209   : > { %694 = vst.msk [vmem:[#allocation3 + $0x8] sm:$0xff] %vm693_vm8, %v677_v54  ;;  %v678_v55 = vsel %vm675_vm0, %v674_v53, %v671_v51 }
 0x20a   : > { %v702_v56 = vsel %vm700_vm5, %v678_v55, %v701_v52 }
 0x20b   : > { %703 = vst [vmem:[#allocation3 + $0x10] sm:$0x11] %v702_v56 }
 0x20e   : > { %v979_v58 = vld [vmem:[#allocation3] sm:$0xee] }
 0x210   : > { %v705_v57 = vld [vmem:[#allocation3 + $0x8] sm:$0xff] }
 0x211   : > { %v1259_v59 = vcombine.high %v689_v49, %v705_v57  ;;  %v1258_v60 = vcombine.low %v689_v49, %v705_v57  ;;  %v1301_v62 = vcombine.high %v979_v58, %v705_v57  ;;  %v1300_v29 = vcombine.low %v979_v58, %v705_v57 }
 0x212   : > { %v724_v63 = vld [vmem:[#allocation3 + $0x10] sm:$0x11] }
 0x213   : > { %1281 = vmatprep.mubr.msk.bf16.mxu1 %vm836_vm1, %v1259_v59  ;;  %v1261_v0 = vcombine.high %v724_v63, %v724_v63  ;;  %v772_v1 = vshll.u32 %v1259_v59, 16  ;;  %v1007_v2 = vrot.slane %v1301_v62, 1  ;;  %v1260_v4 = vcombine.low %v724_v63, %v724_v63 }
 0x214   : > { %971 = vmatmul.mubr.bf16.vlgmr.msra.gmra.mrb[4].mxu1 %v1258_v60  ;;  %v760_v5 = vshll.u32 %v1258_v60, 16  ;;  %v770_v8 = vshrl.u32 %v1259_v59, 16  ;;  %v758_v11 = vshrl.u32 %v1258_v60, 16  ;;  %v1004_v31 = vrot.slane %v1300_v29, 1 }
 0x215   : > { %1069 = vmatpush1.bf16.msra.mxu1 %v1440_v61  ;;  %v1008_v7 = vrot.slane %v1261_v0, 1  ;;  %v774_v9 = vrot.slane %v772_v1, 1  ;;  %v777_v10 = vshll.u32 %v1261_v0, 16  ;;  %v765_v13 = vshll.u32 %v1260_v4, 16 }
 0x216   : > { %1070 = vmatprep.subr.bf16.mxu1 %v1463_v3  ;;  %v762_v12 = vrot.slane %v760_v5, 1  ;;  %v1005_v30 = vrot.slane %v1260_v4, 1 }
 0x217   : > { %v1009_v14 = vsel %vm535_vm14, %v1007_v2, %v1008_v7  ;;  %v775_v15 = vor.u32 %v774_v9, %v770_v8  ;;  %v779_v16 = vrot.slane %v777_v10, 1  ;;  %v767_v18 = vrot.slane %v765_v13, 1 }
 0x218   : > { %1311 = vmatprep.mubr.msk.bf16.mxu1 %vm836_vm1, %v1009_v14  ;;  %v763_v17 = vor.u32 %v762_v12, %v758_v11  ;;  %v1006_v32 = vsel %vm535_vm14, %v1004_v31, %v1005_v30 }
 0x219   : > { %1071 = vmatpush1.bf16.msra.mxu1 %v1442_v6  ;;  %v780_v20 = vsel %vm359_vm13, %v775_v15, %v779_v16 }
 0x21a   : > { %1271 = vmatprep.mubr.msk.bf16.mxu0 %vm836_vm1, %v780_v20  ;;  %v768_v22 = vsel %vm359_vm13, %v763_v17, %v767_v18  ;;  %1072 = vmatprep.subr.bf16.mxu1 %v1463_v3 }
 0x21b   : > { %873 = vmatmul.mubr.bf16.vlgmr.msra.gmra.mrb[4].mxu0 %v768_v22 }
 0x21d   : > { %1073 = vmatpush1.bf16.msra.mxu1 %v1446_v21 }
 0x21e   : > { %1074 = vmatprep.subr.bf16.mxu1 %v1463_v3 }
 0x221   : > { %1075 = vmatpush1.bf16.msra.mxu1 %v1447_v23 }
 0x222   : > { %1076 = vmatprep.subr.bf16.mxu1 %v1463_v3 }
 0x225   : > { %1077 = vmatpush1.bf16.msra.mxu1 %v1448_v24 }
 0x226   : > { %1078 = vmatprep.subr.bf16.mxu1 %v1463_v3 }
 0x229   : > { %1079 = vmatpush1.bf16.msra.mxu1 %v1449_v25 }
 0x22a   : > { %1080 = vmatprep.subr.bf16.mxu1 %v1463_v3 }
 0x22d   : > { %1081 = vmatpush1.bf16.msra.mxu1 %v1450_v26 }
 0x22e   : > { %1082 = vmatprep.subr.bf16.mxu1 %v1463_v3 }
 0x231   : > { %1083 = vmatpush1.bf16.msra.mxu1 %v1451_v27 }
 0x232   : > { %1084 = vmatprep.subr.bf16.mxu1 %v1463_v3  ;;  %v1313_v3 = vld [vmem:[%s1769_s6] ss:$0 sm:$0xff] }
 0x235   : > { %1085 = vmatpush1.bf16.msra.mxu1 %v1452_v28 }
 0x238   : > { %1101 = vmatmul.mubr.bf16.vlgmr.msra.gmra.mrb[4].mxu1 %v1006_v32 }
 0x2ee   : > { %v874_v33 = vpop.f32.mrb[4].mxu0 }
 0x2ef   : > { %v876_v34 = vpop.f32.mrb[5].mxu0 }
 0x2f0   : > { %v877_v35 = vpop.f32.mrb[6].mxu0 }
 0x2f1   : > { %v879_v36 = vpop.f32.mrb[7].mxu0 }
 0x30b   : > { %v1102_v37 = vpop.f32.mrb[4].mxu1 }
 0x30c   : > { %v1382_v39 = vadd.f32 %v1102_v37, %v874_v33  ;;  %v1104_v40 = vpop.f32.mrb[5].mxu1 }
 0x30d   : > { %v1105_v41 = vpop.f32.mrb[6].mxu1 }
 0x30e   : > { %v1118_v42 = vmul.f32 %v1382_v39, %v1312_v38  ;;  %v1383_v43 = vadd.f32 %v1105_v41, %v877_v35  ;;  %v1107_v19 = vpop.f32.mrb[7].mxu1 }
 0x310   : > { %v1127_v44 = vadd.f32 %v1313_v3, %v1118_v42  ;;  %v1119_v45 = vmul.f32 %v1383_v43, %v1312_v38 }
 0x312   : > { %v1129_v46 = vmax.f32 %v1127_v44, 0.0  ;;  %v1128_v47 = vadd.f32 %v1313_v3, %v1119_v45 }
 0x314   : > { %1131 = vst [vmem:[%s278_s20] sm:$0xff] %v1129_v46  ;;  %v1130_v48 = vmax.f32 %v1128_v47, 0.0 }
 0x316   : > { %1132 = vst [vmem:[%s278_s20 + $0x8] sm:$0xff] %v1130_v48 }
 0x317 PF: > { %s17_s24 = sadd.s32 1, %s1460_s24  }
 0x318   : > { %p14_p4 = scmp.ge.s32.totalorder %s17_s24, 4  }
 0x31a   :  { %16 = sbr.rel (!%p14_p4) target bundleno = 1 (0x1), region = 82 }

</bundles_post_ra>
